<compile_context>
chip_gen: v5e
topology: v5e:2x2
jax: 0.10.0
libtpu: 0.0.40
codegen_flags: <defaults>
</compile_context>

<pallas_src>
import jax
import jax.numpy as jnp
from jax.experimental import pallas as pl
from jax.experimental.pallas import tpu as pltpu


def tft_mlp_kernel(xt_ref, w1_ref, b1_ref, w2_ref, b2_ref, w3_ref, b3_ref, ot_ref):
    # Feature-major: columns (lanes) are rows of the flattened [batch*seq] input.
    # Layer 1: (H, d_in) @ (d_in, tm) -> (H, tm); bias + ReLU in f32.
    h1 = jnp.dot(w1_ref[...], xt_ref[...], preferred_element_type=jnp.float32)
    h1 = jnp.maximum(h1 + b1_ref[...], 0.0)
    # Layer 2: (H, H) @ (H, tm) -> (H, tm).
    h2 = jnp.dot(w2_ref[...], h1.astype(jnp.bfloat16),
                 preferred_element_type=jnp.float32)
    h2 = jnp.maximum(h2 + b2_ref[...], 0.0)
    # Layer 3: (4, H) @ (H, tm) -> (4, tm); no activation; lane-dense store.
    out = jnp.dot(w3_ref[...], h2.astype(jnp.bfloat16),
                  preferred_element_type=jnp.float32)
    ot_ref[...] = (out + b3_ref[...]).astype(ot_ref.dtype)


def _choose_row_tile(m, block_m):
    """Lane-dim (row) tile: multiple of 128, large enough to amortize per-step
    overhead, capped so the parallel grid axis has >= 2 steps (v7x megacore)."""
    if m <= 128:
        return m                          # full-array block; single step
    block_m = max(128, (block_m // 128) * 128)
    half = ((m // 2) // 128) * 128        # largest 128-multiple <= m/2
    return max(128, min(block_m, half))


def tft_forward(x, params, *, block_m=2048):
    """x: [batch, seq, input_size] float32 -> [batch, seq, 4] float32."""
    w1, b1, w2, b2, w3, b3 = params       # PyTorch layouts: W (out, in), b (out, 1)
    batch, seq, d_in = x.shape
    hidden = w1.shape[0]
    d_out = w3.shape[0]
    m = batch * seq

    # Feature-major (lane-dense) presentation of the activations; bf16 operands.
    xt = x.reshape(m, d_in).T.astype(jnp.bfloat16)          # (d_in, m)
    w1b = w1.astype(jnp.bfloat16)
    w2b = w2.astype(jnp.bfloat16)
    w3b = w3.astype(jnp.bfloat16)

    tm = _choose_row_tile(m, block_m)
    grid = (pl.cdiv(m, tm),)

    flops = 2 * m * (d_in * hidden + hidden * hidden + hidden * d_out)
    bytes_accessed = (m * d_in * 2 + m * d_out * 4
                      + (w1.size + w2.size + w3.size) * 2
                      + (b1.size + b2.size + b3.size) * 4)

    out_t = pl.pallas_call(
        tft_mlp_kernel,
        out_shape=jax.ShapeDtypeStruct((d_out, m), jnp.float32),
        grid_spec=pltpu.PrefetchScalarGridSpec(
            num_scalar_prefetch=0,
            grid=grid,
            in_specs=[
                pl.BlockSpec((d_in, tm), lambda i: (0, i)),       # x^T row tile
                pl.BlockSpec((hidden, d_in), lambda i: (0, 0)),   # W1 (full, resident)
                pl.BlockSpec((hidden, 1), lambda i: (0, 0)),      # b1
                pl.BlockSpec((hidden, hidden), lambda i: (0, 0)), # W2
                pl.BlockSpec((hidden, 1), lambda i: (0, 0)),      # b2
                pl.BlockSpec((d_out, hidden), lambda i: (0, 0)),  # W3
                pl.BlockSpec((d_out, 1), lambda i: (0, 0)),       # b3
            ],
            out_specs=pl.BlockSpec((d_out, tm), lambda i: (0, i)),
        ),
        compiler_params=pltpu.CompilerParams(
            dimension_semantics=("parallel",),
            vmem_limit_bytes=32 * 1024 * 1024),
        cost_estimate=pl.CostEstimate(
            flops=flops, transcendentals=0, bytes_accessed=bytes_accessed),
    )(xt, w1b, b1, w2b, b2, w3b, b3)

    return out_t.T.reshape(batch, seq, d_out)


def init_params(key, input_size, hidden_size=64, out_size=4):
    """Deterministic synthetic parameters in native PyTorch nn.Linear layout."""
    k1, k2, k3, k4, k5, k6 = jax.random.split(key, 6)
    s1 = 1.0 / jnp.sqrt(input_size)
    s2 = 1.0 / jnp.sqrt(hidden_size)
    w1 = jax.random.uniform(k1, (hidden_size, input_size), jnp.float32, -s1, s1)
    b1 = jax.random.uniform(k2, (hidden_size, 1), jnp.float32, -s1, s1)
    w2 = jax.random.uniform(k3, (hidden_size, hidden_size), jnp.float32, -s2, s2)
    b2 = jax.random.uniform(k4, (hidden_size, 1), jnp.float32, -s2, s2)
    w3 = jax.random.uniform(k5, (out_size, hidden_size), jnp.float32, -s2, s2)
    b3 = jax.random.uniform(k6, (out_size, 1), jnp.float32, -s2, s2)
    return (w1, b1, w2, b2, w3, b3)


def reference_forward(x, params):
    """Full-f32 reference matching the PyTorch module semantics."""
    w1, b1, w2, b2, w3, b3 = params
    h = jnp.maximum(x @ w1.T + b1[:, 0], 0.0)
    h = jnp.maximum(h @ w2.T + b2[:, 0], 0.0)
    return h @ w3.T + b3[:, 0]


if __name__ == "__main__":
    key = jax.random.PRNGKey(0)
    kx, kp = jax.random.split(key)

    batch, seq, input_size, hidden_size = 4, 64, 16, 64   # m=256 -> 2 grid steps
    x = jax.random.normal(kx, (batch, seq, input_size), jnp.float32)
    params = init_params(kp, input_size, hidden_size)

    out = tft_forward(x, params)
    out = jax.block_until_ready(out)

    ref = reference_forward(x, params)
    assert out.shape == (batch, seq, 4), out.shape
    # bf16 matmul operands with f32 accumulation: tolerance sized for bf16 rounding.
    assert jnp.allclose(out, ref, atol=2e-2, rtol=2e-2), "mismatch vs JAX reference"

    print("KERNEL_OK")
</pallas_src>

<mosaic_0001>
module attributes {stable_mosaic.version = 11 : i64} {
  func.func @tft_mlp_kernel(%arg0: i32, %arg1: memref<16x128xbf16, #tpu.memory_space<vmem>>, %arg2: memref<64x16xbf16, #tpu.memory_space<vmem>>, %arg3: memref<64x1xf32, #tpu.memory_space<vmem>>, %arg4: memref<64x64xbf16, #tpu.memory_space<vmem>>, %arg5: memref<64x1xf32, #tpu.memory_space<vmem>>, %arg6: memref<4x64xbf16, #tpu.memory_space<vmem>>, %arg7: memref<4x1xf32, #tpu.memory_space<vmem>>, %arg8: memref<4x128xf32, #tpu.memory_space<vmem>>) attributes {dimension_semantics = [#tpu.dimension_semantics<parallel>], iteration_bounds = array<i64: 2>, scalar_prefetch = 0 : i64, scratch_operands = 0 : i64, tpu.core_type = #tpu.core_type<tc>, window_params = [{transform_indices = @transform_0, window_bounds = array<i64: 16, 128>}, {pipeline_mode = #tpu.pipeline_mode<synchronous>, transform_indices = @transform_1, window_bounds = array<i64: 64, 16>}, {pipeline_mode = #tpu.pipeline_mode<synchronous>, transform_indices = @transform_2, window_bounds = array<i64: 64, 1>}, {pipeline_mode = #tpu.pipeline_mode<synchronous>, transform_indices = @transform_3, window_bounds = array<i64: 64, 64>}, {pipeline_mode = #tpu.pipeline_mode<synchronous>, transform_indices = @transform_4, window_bounds = array<i64: 64, 1>}, {pipeline_mode = #tpu.pipeline_mode<synchronous>, transform_indices = @transform_5, window_bounds = array<i64: 4, 64>}, {pipeline_mode = #tpu.pipeline_mode<synchronous>, transform_indices = @transform_6, window_bounds = array<i64: 4, 1>}, {transform_indices = @transform_7, window_bounds = array<i64: 4, 128>}]} {
    %c0 = arith.constant 0 : index
    %c0_0 = arith.constant 0 : index
    %0 = vector.load %arg2[%c0, %c0_0] : memref<64x16xbf16, #tpu.memory_space<vmem>>, vector<64x16xbf16>
    %c0_1 = arith.constant 0 : index
    %c0_2 = arith.constant 0 : index
    %1 = vector.load %arg1[%c0_1, %c0_2] : memref<16x128xbf16, #tpu.memory_space<vmem>>, vector<16x128xbf16>
    %cst = arith.constant dense<0.000000e+00> : vector<64x128xf32>
    %2 = tpu.matmul %0, %1, %cst {dimension_numbers = #tpu.dot_dimension_numbers<[1], [0], [0], [1], [0, 0, 1, 1], [], []>} : vector<64x16xbf16>, vector<16x128xbf16>, vector<64x128xf32> -> vector<64x128xf32>
    %c0_3 = arith.constant 0 : index
    %c0_4 = arith.constant 0 : index
    %3 = vector.load %arg3[%c0_3, %c0_4] : memref<64x1xf32, #tpu.memory_space<vmem>>, vector<64x1xf32>
    %4 = vector.broadcast %3 : vector<64x1xf32> to vector<64x128xf32>
    %5 = arith.addf %2, %4 : vector<64x128xf32>
    %cst_5 = arith.constant 0.000000e+00 : f32
    %6 = vector.broadcast %cst_5 : f32 to vector<64x128xf32>
    %7 = arith.maximumf %5, %6 : vector<64x128xf32>
    %c0_6 = arith.constant 0 : index
    %c0_7 = arith.constant 0 : index
    %8 = vector.load %arg4[%c0_6, %c0_7] : memref<64x64xbf16, #tpu.memory_space<vmem>>, vector<64x64xbf16>
    %9 = arith.truncf %7 : vector<64x128xf32> to vector<64x128xbf16>
    %cst_8 = arith.constant dense<0.000000e+00> : vector<64x128xf32>
    %10 = tpu.matmul %8, %9, %cst_8 {dimension_numbers = #tpu.dot_dimension_numbers<[1], [0], [0], [1], [0, 0, 1, 1], [], []>} : vector<64x64xbf16>, vector<64x128xbf16>, vector<64x128xf32> -> vector<64x128xf32>
    %c0_9 = arith.constant 0 : index
    %c0_10 = arith.constant 0 : index
    %11 = vector.load %arg5[%c0_9, %c0_10] : memref<64x1xf32, #tpu.memory_space<vmem>>, vector<64x1xf32>
    %12 = vector.broadcast %11 : vector<64x1xf32> to vector<64x128xf32>
    %13 = arith.addf %10, %12 : vector<64x128xf32>
    %cst_11 = arith.constant 0.000000e+00 : f32
    %14 = vector.broadcast %cst_11 : f32 to vector<64x128xf32>
    %15 = arith.maximumf %13, %14 : vector<64x128xf32>
    %c0_12 = arith.constant 0 : index
    %c0_13 = arith.constant 0 : index
    %16 = vector.load %arg6[%c0_12, %c0_13] : memref<4x64xbf16, #tpu.memory_space<vmem>>, vector<4x64xbf16>
    %17 = arith.truncf %15 : vector<64x128xf32> to vector<64x128xbf16>
    %cst_14 = arith.constant dense<0.000000e+00> : vector<4x128xf32>
    %18 = tpu.matmul %16, %17, %cst_14 {dimension_numbers = #tpu.dot_dimension_numbers<[1], [0], [0], [1], [0, 0, 1, 1], [], []>} : vector<4x64xbf16>, vector<64x128xbf16>, vector<4x128xf32> -> vector<4x128xf32>
    %c0_15 = arith.constant 0 : index
    %c0_16 = arith.constant 0 : index
    %19 = vector.load %arg7[%c0_15, %c0_16] : memref<4x1xf32, #tpu.memory_space<vmem>>, vector<4x1xf32>
    %20 = vector.broadcast %19 : vector<4x1xf32> to vector<4x128xf32>
    %21 = arith.addf %18, %20 : vector<4x128xf32>
    %c0_17 = arith.constant 0 : index
    %c0_18 = arith.constant 0 : index
    %22 = vector.load %arg8[%c0_17, %c0_18] : memref<4x128xf32, #tpu.memory_space<vmem>>, vector<4x128xf32>
    tpu.vector_store %arg8[%c0_17, %c0_18], %21 {strides = array<i32>} : memref<4x128xf32, #tpu.memory_space<vmem>>, vector<4x128xf32>,
    return
  }
  func.func @transform_0(%arg0: i32) -> (i32, i32) {
    %c0_i32 = arith.constant 0 : i32
    %c0_i32_0 = arith.constant 0 : i32
    return %c0_i32, %arg0 : i32, i32
  }
  func.func @transform_1(%arg0: i32) -> (i32, i32) {
    %c0_i32 = arith.constant 0 : i32
    %c0_i32_0 = arith.constant 0 : i32
    %c0_i32_1 = arith.constant 0 : i32
    return %c0_i32, %c0_i32_0 : i32, i32
  }
  func.func @transform_2(%arg0: i32) -> (i32, i32) {
    %c0_i32 = arith.constant 0 : i32
    %c0_i32_0 = arith.constant 0 : i32
    %c0_i32_1 = arith.constant 0 : i32
    return %c0_i32, %c0_i32_0 : i32, i32
  }
  func.func @transform_3(%arg0: i32) -> (i32, i32) {
    %c0_i32 = arith.constant 0 : i32
    %c0_i32_0 = arith.constant 0 : i32
    %c0_i32_1 = arith.constant 0 : i32
    return %c0_i32, %c0_i32_0 : i32, i32
  }
  func.func @transform_4(%arg0: i32) -> (i32, i32) {
    %c0_i32 = arith.constant 0 : i32
    %c0_i32_0 = arith.constant 0 : i32
    %c0_i32_1 = arith.constant 0 : i32
    return %c0_i32, %c0_i32_0 : i32, i32
  }
  func.func @transform_5(%arg0: i32) -> (i32, i32) {
    %c0_i32 = arith.constant 0 : i32
    %c0_i32_0 = arith.constant 0 : i32
    %c0_i32_1 = arith.constant 0 : i32
    return %c0_i32, %c0_i32_0 : i32, i32
  }
  func.func @transform_6(%arg0: i32) -> (i32, i32) {
    %c0_i32 = arith.constant 0 : i32
    %c0_i32_0 = arith.constant 0 : i32
    %c0_i32_1 = arith.constant 0 : i32
    return %c0_i32, %c0_i32_0 : i32, i32
  }
  func.func @transform_7(%arg0: i32) -> (i32, i32) {
    %c0_i32 = arith.constant 0 : i32
    %c0_i32_0 = arith.constant 0 : i32
    return %c0_i32, %arg0 : i32, i32
  }
}

</mosaic_0001>

<bundles_post_ra>
// kernel: tpu_custom_call.1
= control target key start
LH: loop header
LB: loop body
LE: loop exit
PB: predicated region body
PF: predicated region fallthrough
CT: control target
= control target key end

     0   :  { %12 = vsyncpa [#allocation4], 0  ;;  %s1103_s0 = inlined_call_operand.vmem [shape: bf16[16,256], index: 0, kind: input, shape index: {}]   ;;  %s1104_s1 = inlined_call_operand.vmem [shape: bf16[64,16], index: 1, kind: input, shape index: {}]   ;;  %s1105_s2 = inlined_call_operand.vmem [shape: f32[64,1], index: 2, kind: input, shape index: {}]   ;;  %s1106_s3 = inlined_call_operand.vmem [shape: bf16[64,64], index: 3, kind: input, shape index: {}]   ;;  %s1107_s4 = inlined_call_operand.vmem [shape: f32[64,1], index: 4, kind: input, shape index: {}]   ;;  %s1108_s5 = inlined_call_operand.vmem [shape: bf16[4,64], index: 5, kind: input, shape index: {}]   ;;  %s1109_s6 = inlined_call_operand.vmem [shape: f32[4,1], index: 6, kind: input, shape index: {}]   ;;  %s1110_s7 = inlined_call_operand.hbm [shape: f32[4,256], index: 7, kind: output, shape index: {}]  }
   0x1   :  { %14 = vsyncpa [#allocation4 + $0x1], 0  ;;  %s921_s24 = smov 0   ;;  %s923_s25 = smov 0  }
   0x2   :  { %s925_s26 = smov 0   ;;  %s927_s27 = smov 0  }
   0x3 LB: > { %s697_s28 = sadd.s32 4294967295, %s878_s27   ;;  %s698_s29 = sadd.s32 4294967294, %s878_s27   ;;  %s878_s27 = sphi %s927_s27, %s1116_s27   ;;  %s874_s26 = sphi %s925_s26, %s1115_s26   ;;  %s870_s25 = sphi %s923_s25, %s1114_s25   ;;  %s866_s24 = sphi %s921_s24, %s1113_s24  }
   0x4   : > { %s944_s30 = sadd.s32 1, %s878_s27   ;;  %s27_s8 = sadd.s32 1, %s874_s26 }
   0x5   : > { %s24_s9 = ssub.s32 %s878_s27, %s944_s30  ;;  %p34_p0 = scmp.ne.s32.totalorder %s874_s26, %s870_s25 }
   0x6   : > { %p25_p1 = scmp.eq.s32.totalorder %s24_s9, 0  ;;  %p35_p2 = scmp.eq.s32.totalorder %s878_s27, 0 }
   0x7   : > { %p190_p3 = scmp.eq.s32.totalorder %s697_s28, 1  ;;  %p195_p4 = scmp.ne.s32.totalorder %s870_s25, %s866_s24 }
   0x8   : > { %s957_s10 = scalar_select %p25_p1, %s874_s26, %s27_s8  }
   0x9   : > { %p36_p5 = por %p35_p2, %p34_p0  ;;  %p959_p6 = por %p190_p3, %p34_p0 }
   0xa   : > { %p196_p7 = scmp.eq.s32.totalorder %s698_s29, 1  ;;  %p700_p9 = scmp.ge.s32.totalorder %s878_s27, 2 }
   0xc   : > { %p963_p8 = por %p196_p7, %p195_p4  ;;  %230 = sbr.rel (%p700_p9) target bundleno = 23 (0x17), region = 40 }
  0x11   : > { %233 = sbr.rel (!%p36_p5) target bundleno = 23 (0x17), region = 44  ;;  %s235_s13 = sand.u32 (%p36_p5), 1, %s874_s26  }
  0x12   : > { %s702_s14 = sshll.u32 (%p36_p5), %s878_s27, 2  ;;  %s701_s15 = sshll.u32 (%p36_p5), %s235_s13, 3 }
  0x13   : > { %s239_s18 = scalar_lea.vmem (%p36_p5), %s1103_s0, %s702_s14  ;;  %s237_s19 = scalar_lea.vmem (%p36_p5), [#allocation2], %s701_s15 }
  0x14   : > { %v256_v0 = vld [vmem:[%s239_s18] sm:$0xf] (%p36_p5)  ;;  %v258_v1 = vld [vmem:[%s239_s18 + $0x8] sm:$0xf] (%p36_p5) }
  0x15   : > { %257 = vst [vmem:[%s237_s19] sm:$0xf] (%p36_p5), %v256_v0 }
  0x16   : > { %259 = vst [vmem:[%s237_s19 + $0x4] sm:$0xf] %v258_v1 }
  0x17 PF: > { %p703_p10 = scmp.ge.s32.totalorder %s878_s27, 1  ;;  %p286_p11 = scmp.lt.s32.totalorder %s878_s27, 3 }
  0x19   : > { %p287_p12 = pnand %p703_p10, %p286_p11 }
  0x1a   : > { %s981_s22 = sand.u32 (!%p287_p12), 1, %s870_s25   ;;  %s836_s21 = scalar_lea.hbm (!%p287_p12), %s1110_s7, 8 }
  0x1b   : > { %290 = sbr.rel (%p287_p12) target bundleno = 539 (0x21b), region = 85  ;;  %s704_s23 = sshll.u32 (!%p287_p12), %s981_s22, 3 }
  0x1c   : > { %s295_s9 = scalar_lea.vmem (!%p287_p12), [#allocation2], %s704_s23  ;;  %s752_s23 = sshll.u32 (!%p287_p12), %s697_s28, 2 }
  0x1d   : > { %s705_s29 = sshll.u32 (!%p287_p12), %s981_s22, 2  ;;  %s628_s13 = scalar_lea.hbm (!%p287_p12), %s1110_s7, %s752_s23 }
  0x1e   : > { %s323_s14 = scalar_lea.vmem (!%p287_p12), [#allocation3], %s705_s29  ;;  %s632_s16 = sshll.u32 (!%p287_p12), %s628_s13, 4  ;;  %s633_s16 = int_to_ptr.hbm [resolvable:$true] %s632_s16 }
  0x1f   : > { %s630_s15 = sshll.u32 (!%p287_p12), %s323_s14, 4  ;;  %s618_s17 = scalar_lea.sflag (!%p287_p12), [#allocation4], %s981_s22  ;;  %s631_s15 = int_to_ptr.vmem [resolvable:$true] %s630_s15 }
  0x20   : > { %v341_v2 = vld [vmem:[%s1105_s2 + $0x30] sm:$0xff]  ;;  %v880_v3 = vmov 0   ;;  %v339_v4 = vld [vmem:[%s1105_s2 + $0x20] sm:$0xff]  ;;  %v758_v7 = vld [vmem:[%s1104_s1 + $0x18] sm:$0xff]  ;;  %vm409_vm0 = vcmask 130048   ;;  %vm539_vm1 = vcmask 523264  }
  0x21   : > { %813 = vset.pattern.permute.xlu0 %v880_v3  ;;  %814 = vset.pattern.permute.xlu1 %v880_v3  ;;  %v759_v5 = vld [vmem:[%s295_s9] sm:$0xff]  ;;  %v342_v8 = vld [vmem:[%s1105_s2 + $0x38] sm:$0xff]  ;;  %v337_v10 = vld [vmem:[%s1105_s2 + $0x10] sm:$0xff]  ;;  %s830_s18 = sshra.s32 %s633_s16, 4  ;;  %s831_s18 = int_to_ptr.hbm [resolvable:$true] %s830_s18 }
  0x22   : > { %375 = vperm.xlu0 %813, %v341_v2   ;;  %365 = vperm.xlu1 %814, %v339_v4   ;;  %v755_v6 = vld [vmem:[%s1104_s1] sm:$0xff]  ;;  %v340_v9 = vld [vmem:[%s1105_s2 + $0x28] sm:$0xff]  ;;  %v338_v11 = vld [vmem:[%s1105_s2 + $0x18] sm:$0xff]  ;;  %s832_s19 = scalar_lea.hbm %s831_s18, 4  ;;  %p837_p2 = scmp.lt.s32.totalorder %s831_s18, %s1110_s7 }
  0x23   : > { %815 = vset.pattern.permute.xlu2 %v880_v3  ;;  %429 = vmatpush.bf16.msra.mxu0 %v759_v5  ;;  %v335_v12 = vld [vmem:[%s1105_s2] sm:$0xff]  ;;  %v336_v13 = vld [vmem:[%s1105_s2 + $0x8] sm:$0xff]  ;;  %v477_v15 = vld [vmem:[%s1107_s4 + $0x30] sm:$0xff]  ;;  %p833_p13 = scmp.ne.s32.totalorder %s831_s18, %s832_s19  ;;  %p838_p3 = scmp.lt.s32.totalorder %s836_s21, %s832_s19 }
  0x24   : > { %764 = vmatpush.bf16.msra.mxu1 %v759_v5  ;;  %355 = vperm.xlu2 %815, %v337_v10   ;;  %v756_v14 = vld [vmem:[%s1104_s1 + $0x8] sm:$0xff]  ;;  %v478_v16 = vld [vmem:[%s1107_s4 + $0x38] sm:$0xff]  ;;  %v475_v17 = vld [vmem:[%s1107_s4 + $0x20] sm:$0xff] }
  0x25   : > { %v476_v18 = vld [vmem:[%s1107_s4 + $0x28] sm:$0xff]  ;;  %v473_v19 = vld [vmem:[%s1107_s4 + $0x10] sm:$0xff]  ;;  %v474_v20 = vld [vmem:[%s1107_s4 + $0x18] sm:$0xff]  ;;  %p834_p0 = pnand %p833_p13, %p959_p6  ;;  %p839_p4 = por %p838_p3, %p837_p2 }
  0x26   : > { %726 = vmatmul.msk.bf16.vlgmr.msra.gmra.mxu0 %vm409_vm0, %v755_v6  ;;  %v757_v21 = vld [vmem:[%s1104_s1 + $0x10] sm:$0xff]  ;;  %v471_v22 = vld [vmem:[%s1107_s4] sm:$0xff]  ;;  %v472_v23 = vld [vmem:[%s1107_s4 + $0x8] sm:$0xff] }
  0x27   : > { %729 = vmatmul.msk.bf16.vlgmr.msra.gmra.mxu1 %vm409_vm0, %v758_v7  ;;  %v594_v24 = vld [vmem:[%s1109_s6] sm:$0xf]  ;;  %v761_v62 = vld [vmem:[%s1106_s3 + $0x8] sm:$0xff]  ;;  %v762_v63 = vld [vmem:[%s1106_s3 + $0x10] sm:$0xff]  ;;  %p835_p1 = pneg %p834_p0 }
  0x28   : > { %v760_v61 = vld [vmem:[%s1106_s3] sm:$0xff]  ;;  %v763_v0 = vld [vmem:[%s1106_s3 + $0x18] sm:$0xff] }
  0x29   : > { %p840_p5 = pnand %p839_p4, %p835_p1 }
  0x2a   : > { %380 = vperm.xlu0 %813, %v342_v8   ;;  %370 = vperm.xlu1 %814, %v340_v9  }
  0x2c   : > { %360 = vperm.xlu2 %815, %v338_v11  }
  0x32   : > { %345 = vperm.xlu0 %813, %v335_v12   ;;  %350 = vperm.xlu1 %814, %v336_v13  }
  0x34   : > { %511 = vperm.xlu2 %815, %v477_v15  }
  0x36   : > { %727 = vmatmul.msk.bf16.gmra.mxu0 %vm409_vm0, %v756_v14 }
  0x3a   : > { %516 = vperm.xlu0 %813, %v478_v16   ;;  %501 = vperm.xlu1 %814, %v475_v17  }
  0x3c   : > { %506 = vperm.xlu2 %815, %v476_v18  }
  0x42   : > { %491 = vperm.xlu0 %813, %v473_v19   ;;  %496 = vperm.xlu1 %814, %v474_v20  }
  0x44   : > { %481 = vperm.xlu2 %815, %v471_v22  }
  0x46   : > { %728 = vmatmul.msk.bf16.gmra.mxu0 %vm409_vm0, %v757_v21 }
  0x4a   : > { %486 = vperm.xlu0 %813, %v472_v23   ;;  %597 = vperm.xlu1 %814, %v594_v24  }
  0x7e   : > { %v356_v39 = vpop.permute.xlu2 %355 }
  0x86   : > { %v361_v43 = vpop.permute.xlu2 %360 }
  0x8e   : > { %v512_v4 = vpop.permute.xlu2 %511 }
  0x94   : > { %v376_v25 = vpop.permute.xlu0 %375  ;;  %v366_v37 = vpop.permute.xlu1 %365 }
  0x96   : > { %v507_v11 = vpop.permute.xlu2 %506 }
  0x9c   : > { %v381_v29 = vpop.permute.xlu0 %380  ;;  %v371_v40 = vpop.permute.xlu1 %370 }
  0xa3   : > { %v431_v26 = vpop.f32.mrf.mxu0 }
  0xa4   : > { %v446_v27 = vpop.f32.mrf.mxu1  ;;  %v351_v47 = vpop.permute.xlu1 %350 }
  0xa5   : > { %v447_v28 = vadd.f32 %v446_v27, %v376_v25  ;;  %v346_v51 = vpop.permute.xlu0 %345 }
  0xa6   : > { %v432_v55 = vadd.f32 %v431_v26, %v346_v51 }
  0xa7   : > { %v457_v32 = vmax.f32 %v447_v28, 0.0 }
  0xa8   : > { %v451_v59 = vmax.f32 %v432_v55, 0.0 }
  0xab   : > { %v433_v30 = vpop.f32.mrf.mxu0 }
  0xac   : > { %v448_v31 = vpop.f32.mrf.mxu1  ;;  %v434_v52 = vadd.f32 %v433_v30, %v351_v47  ;;  %v502_v7 = vpop.permute.xlu1 %501 }
  0xad   : > { %v449_v33 = vadd.f32 %v448_v31, %v381_v29  ;;  %v517_v3 = vpop.permute.xlu0 %516  ;;  %v482_v30 = vpop.permute.xlu2 %481 }
  0xae   : > { %v452_v57 = vmax.f32 %v434_v52, 0.0 }
  0xaf   : > { %v458_v34 = vmax.f32 %v449_v33, 0.0 }
  0xb0   : > { %v467_v60 = vpack.c.bf16 %v452_v57, %v451_v59 }
  0xb1   : > { %v470_v35 = vpack.c.bf16 %v458_v34, %v457_v32 }
  0xb3   : > { %556 = vmatpush.bf16.msrb.mxu1 %v470_v35  ;;  %765 = vmatpush.bf16.msra.mxu2 %v470_v35  ;;  %v436_v36 = vpop.f32.mrf.mxu0 }
  0xb4   : > { %766 = vmatpush.bf16.msra.mxu3 %v470_v35  ;;  %v437_v48 = vadd.f32 %v436_v36, %v356_v39  ;;  %v497_v19 = vpop.permute.xlu1 %496 }
  0xb5   : > { %v492_v9 = vpop.permute.xlu0 %491 }
  0xb6   : > { %v453_v56 = vmax.f32 %v437_v48, 0.0 }
  0xbb   : > { %v438_v38 = vpop.f32.mrf.mxu0 }
  0xbc   : > { %v439_v45 = vadd.f32 %v438_v38, %v361_v43  ;;  %v598_v38 = vpop.permute.xlu1 %597 }
  0xbd   : > { %v487_v26 = vpop.permute.xlu0 %486 }
  0xbe   : > { %v454_v53 = vmax.f32 %v439_v45, 0.0 }
  0xc0   : > { %v468_v58 = vpack.c.bf16 %v454_v53, %v453_v56 }
  0xc3   : > { %v441_v41 = vpop.f32.mrf.mxu0 }
  0xc4   : > { %v442_v42 = vadd.f32 %v441_v41, %v366_v37  ;;  %v589_v37 = vld [vmem:[%s1108_s5] sm:$0x3] }
  0xc6   : > { %v455_v49 = vmax.f32 %v442_v42, 0.0 }
  0xcb   : > { %v443_v44 = vpop.f32.mrf.mxu0 }
  0xcc   : > { %v444_v46 = vadd.f32 %v443_v44, %v371_v40 }
  0xce   : > { %v456_v50 = vmax.f32 %v444_v46, 0.0 }
  0xd0   : > { %v469_v54 = vpack.c.bf16 %v456_v50, %v455_v49 }
  0xd2   : > { %557 = vmatpush.bf16.msrb.mxu1 %v469_v54  ;;  %767 = vmatpush.bf16.msra.mxu2 %v469_v54 }
  0xd3   : > { %768 = vmatpush.bf16.msra.mxu3 %v469_v54 }
  0xd6   : > { %558 = vmatpush.bf16.msrb.mxu1 %v468_v58  ;;  %769 = vmatpush.bf16.msra.mxu2 %v468_v58 }
  0xd7   : > { %770 = vmatpush.bf16.msra.mxu3 %v468_v58 }
  0xda   : > { %559 = vmatpush.bf16.msrb.mxu1 %v467_v60  ;;  %771 = vmatpush.bf16.msra.mxu2 %v467_v60 }
  0xdb   : > { %772 = vmatpush.bf16.msra.mxu3 %v467_v60 }
  0xdd   : > { %746 = vmatmul.msk.bf16.vlgmr.msrb.gmra.mxu1 %vm539_vm1, %v760_v61  ;;  %747 = vmatmul.msk.bf16.vlgmr.msra.gmra.mxu2 %vm539_vm1, %v761_v62 }
  0xde   : > { %748 = vmatmul.msk.bf16.vlgmr.msra.gmra.mxu3 %vm539_vm1, %v762_v63 }
  0xee   : > { %749 = vmatmul.msk.bf16.gmra.mxu3 %vm539_vm1, %v763_v0 }
 0x15a   : > { %v561_v8 = vpop.f32.mrf.mxu1 }
 0x15b   : > { %v562_v31 = vadd.f32 %v561_v8, %v482_v30 }
 0x15d   : > { %v581_v35 = vmax.f32 %v562_v31, 0.0 }
 0x160   : > { %v566_v5 = vpop.f32.mrf.mxu2 }
 0x161   : > { %v571_v1 = vpop.f32.mrf.mxu3  ;;  %v567_v24 = vadd.f32 %v566_v5, %v492_v9 }
 0x162   : > { %v572_v16 = vadd.f32 %v571_v1, %v502_v7  ;;  %v563_v23 = vpop.f32.mrf.mxu1 }
 0x163   : > { %v564_v27 = vadd.f32 %v563_v23, %v487_v26  ;;  %v583_v32 = vmax.f32 %v567_v24, 0.0 }
 0x164   : > { %v585_v25 = vmax.f32 %v572_v16, 0.0 }
 0x165   : > { %v582_v33 = vmax.f32 %v564_v27, 0.0 }
 0x167   : > { %v590_v36 = vpack.c.bf16 %v582_v33, %v581_v35 }
 0x168   : > { %v568_v15 = vpop.f32.mrf.mxu2 }
 0x169   : > { %v573_v2 = vpop.f32.mrf.mxu3  ;;  %v569_v20 = vadd.f32 %v568_v15, %v497_v19 }
 0x16a   : > { %v574_v13 = vadd.f32 %v573_v2, %v507_v11 }
 0x16b   : > { %v584_v28 = vmax.f32 %v569_v20, 0.0 }
 0x16c   : > { %v586_v21 = vmax.f32 %v574_v13, 0.0 }
 0x16d   : > { %v591_v34 = vpack.c.bf16 %v584_v28, %v583_v32 }
 0x16e   : > { %v592_v29 = vpack.c.bf16 %v586_v21, %v585_v25 }
 0x171   : > { %v576_v6 = vpop.f32.mrf.mxu3 }
 0x172   : > { %v577_v10 = vadd.f32 %v576_v6, %v512_v4 }
 0x174   : > { %v587_v17 = vmax.f32 %v577_v10, 0.0 }
 0x179   : > { %v578_v12 = vpop.f32.mrf.mxu3 }
 0x17a   : > { %v579_v14 = vadd.f32 %v578_v12, %v517_v3 }
 0x17c   : > { %v588_v18 = vmax.f32 %v579_v14, 0.0 }
 0x17e   : > { %v593_v22 = vpack.c.bf16 %v588_v18, %v587_v17 }
 0x180   : > { %607 = vmatpush.bf16.msrb.mxu2 %v593_v22 }
 0x184   : > { %608 = vmatpush.bf16.msrb.mxu2 %v592_v29 }
 0x188   : > { %609 = vmatpush.bf16.msrb.mxu2 %v591_v34 }
 0x18c   : > { %610 = vmatpush.bf16.msrb.mxu2 %v590_v36 }
 0x18f   : > { %750 = vmatmul.msk.bf16.vlgmr.msrb.gmra.mxu2 %vm539_vm1, %v589_v37 }
 0x212   : > { %v612_v39 = vpop.f32.mrf.mxu2 }
 0x213   : > { %v613_v40 = vadd.f32 %v612_v39, %v598_v38 }
 0x215   : > { %616 = vst [vmem:[%s323_s14] sm:$0xf] %v613_v40 }
 0x216   : > { %843 = shalt.err (!%p840_p5)
}
 0x217   : > { %773 = dma.vmem_to_hbm [thread:$0]  (%p959_p6), %s631_s15, 64, %s633_s16, %s618_s17  }
 0x21a   : > { %v614_v41 = vpop.f32.mrf.mxu2 }
 0x21b PF: > { %s644_s22 = sand.u32 1, %s866_s24   ;;  %p776_p7 = pnand %p700_p9, %p963_p8 }
 0x21c   : > { %s645_s8 = scalar_lea.sflag [#allocation4], %s644_s22 }
 0x21d   : > { %p777_p10 = pneg %p776_p7 }
 0x21f   : > { %861 = dma.done.wait (%p777_p10), %s645_s8, 64  }
 0x220   : > { %863 = vsyncadd (%p777_p10), %s645_s8, 4294967232  ;;  %p17_p11 = scmp.ge.s32.totalorder %s944_s30, 4   ;;  %s1113_s24 = smov %s870_s25 }
 0x221   : > { %s1114_s25 = smov %s874_s26  ;;  %s1115_s26 = smov %s957_s10 }
 0x222   : > { %s1116_s27 = smov %s944_s30  ;;  %19 = sbr.rel (!%p17_p11) target bundleno = 3 (0x3), region = 129 }
 0x227   :  { %651 = vsyncpa [#allocation4], 1 }
 0x228   :  { %653 = vsyncpa [#allocation4 + $0x1], 1 }

</bundles_post_ra>
